<compile_context>
chip_gen: v6e
topology: v6e:2x2x1
jax: 0.10.0
libtpu: 0.0.40
codegen_flags: <defaults>
</compile_context>

<pallas_src>
import jax
import jax.numpy as jnp
from jax import lax
from jax.experimental import pallas as pl
from jax.experimental.pallas import tpu as pltpu


# ----------------------------------------------------------------------------
# Generation-aware VMEM budget
# ----------------------------------------------------------------------------
def _vmem_limit_bytes():
    """Pick a scoped-VMEM limit from the chip's physical VMEM capacity."""
    cap = 64 * 1024 * 1024                    # conservative fallback (v7x-sized)
    try:
        info = pltpu.get_tpu_info()
        cap = int(getattr(info, "vmem_capacity_bytes", cap) or cap)
    except Exception:
        pass
    # Leave ~32 MiB headroom for compiler-internal scratch; cap at 96 MiB.
    return max(32 << 20, min(cap - (32 << 20), 96 << 20))


# ----------------------------------------------------------------------------
# Kernels
# ----------------------------------------------------------------------------
def _make_resident_kernel(num_layers, D, *, unroll, f=None):
    """All layers resident in VMEM; single invocation (or one batch tile).

    x_ref: (B, D)   w_ref: (L, D, 3D)   b_ref: (L, 1, 3D)   o_ref: (B, D)
    """
    nonlin = f if f is not None else (lambda v: jnp.maximum(v, 0.0))  # ReLU

    def kernel(x_ref, w_ref, b_ref, o_ref):
        def layer(i, h):
            w = w_ref[i]                                   # (D, 3D) bf16/f32
            pre = jnp.dot(h.astype(w.dtype), w,
                          preferred_element_type=jnp.float32) + b_ref[i]
            gate = jax.nn.sigmoid(pre[:, :D])              # lane-aligned slices
            nonl = nonlin(pre[:, D:2 * D])
            lin = pre[:, 2 * D:]
            return lin + gate * (nonl - lin)

        h0 = x_ref[...].astype(jnp.float32)                # carried state, f32
        h = lax.fori_loop(0, num_layers, layer, h0, unroll=unroll)
        o_ref[...] = h.astype(o_ref.dtype)

    return kernel


def _make_pipelined_kernel(D, layers_per_block, total_layers, *, f=None):
    """One grid step = `layers_per_block` layers; state carried in VMEM scratch.

    x_ref: (B, D)  w_ref: (Lb, D, 3D)  b_ref: (Lb, 1, 3D)  o_ref: (B, D)
    """
    nonlin = f if f is not None else (lambda v: jnp.maximum(v, 0.0))  # ReLU
    rem = total_layers % layers_per_block                  # ragged last block

    def kernel(x_ref, w_ref, b_ref, o_ref, h_ref):
        blk = pl.program_id(0)

        @pl.when(blk == 0)
        def _():
            h_ref[...] = x_ref[...].astype(jnp.float32)

        def layer(i, h):
            w = w_ref[i]
            pre = jnp.dot(h.astype(w.dtype), w,
                          preferred_element_type=jnp.float32) + b_ref[i]
            gate = jax.nn.sigmoid(pre[:, :D])
            nonl = nonlin(pre[:, D:2 * D])
            lin = pre[:, 2 * D:]
            return lin + gate * (nonl - lin)

        h0 = h_ref[...]
        if rem == 0:
            h = lax.fori_loop(0, layers_per_block, layer, h0,
                              unroll=layers_per_block <= 8)
        else:
            is_last = blk == pl.num_programs(0) - 1
            n_here = jnp.where(is_last, rem, layers_per_block)
            h = lax.fori_loop(0, n_here, layer, h0)

        h_ref[...] = h
        # Constant output index_map + "arbitrary" layer axis => block stays
        # resident; HBM writeback happens once, at the end of the grid.
        o_ref[...] = h.astype(o_ref.dtype)

    return kernel


# ----------------------------------------------------------------------------
# Parameter preparation (call ONCE at init time — hoisted out of forward)
# ----------------------------------------------------------------------------
def prepare_highway_params(wg, bg, wn, bn, wl, bl, *, weight_dtype=jnp.bfloat16):
    """Fuse [gate | nonlinear | linear] along the output (lane) axis.

    wg/wn/wl: (L, D, D) stored as [in, out] (i.e. PyTorch W^T);
    bg/bn/bl: (L, D) or (L, 1, D).
    Returns (w_fused: (L, D, 3D) weight_dtype, b_fused: (L, 1, 3D) f32).
    """
    L = wg.shape[0]
    w_fused = jnp.concatenate([wg, wn, wl], axis=-1).astype(weight_dtype)
    b_fused = jnp.concatenate([b.reshape(L, 1, -1) for b in (bg, bn, bl)],
                              axis=-1).astype(jnp.float32)
    return w_fused, b_fused


# ----------------------------------------------------------------------------
# Forward pass
# ----------------------------------------------------------------------------
def highway_apply(x, w_fused, b_fused, *, f=None,
                  resident_weight_budget_bytes=None,
                  layers_per_block=None):
    """x: (B, D); w_fused: (L, D, 3D); b_fused: (L, 1, 3D)."""
    B, D = x.shape
    L = w_fused.shape[0]
    if D % 128 != 0:
        # TODO(synk): pad each gate/nonlinear/linear segment to a lane multiple
        # instead of asserting (fused-slice trick needs D % 128 == 0).
        raise ValueError("Highway kernel requires input_size % 128 == 0")
    assert w_fused.shape == (L, D, 3 * D)
    assert b_fused.shape == (L, 1, 3 * D)

    vmem_limit = _vmem_limit_bytes()
    itemsize = jnp.dtype(w_fused.dtype).itemsize
    w_bytes = L * D * 3 * D * itemsize
    # Rough VMEM bill for x/out/h + (B,3D) temporaries + f32 biases + margin.
    act_bytes = 4 * (B * D * 4) + 4 * (B * 3 * D * 4) + L * 3 * D * 4 + (2 << 20)

    if resident_weight_budget_bytes is None:
        resident_budget = max(0, (2 * vmem_limit) // 3 - act_bytes)
    else:
        resident_budget = resident_weight_budget_bytes

    # ---------------- Resident fast path (weights fit VMEM) ----------------
    if w_bytes <= resident_budget:
        kernel = _make_resident_kernel(L, D, unroll=(L <= 8), f=f)

        # v7x megacore: shard large (compute-bound) batches across TensorCores.
        # The batch grid re-introduces double-buffering of the weight block,
        # so require 2x weight bytes to fit. Not worth it at small B.
        batch_block = B
        if B >= 512 and B % 256 == 0 and 2 * w_bytes <= resident_budget:
            batch_block = 256

        if batch_block == B:
            # Grid-less call: single invocation -> no pipeline -> every operand
            # is single-buffered in VMEM (no 2x weight buffers).
            return pl.pallas_call(
                kernel,
                out_shape=jax.ShapeDtypeStruct((B, D), x.dtype),
                in_specs=[pl.BlockSpec(memory_space=pltpu.MemorySpace.VMEM)] * 3,
                out_specs=pl.BlockSpec(memory_space=pltpu.MemorySpace.VMEM),
                compiler_params=pltpu.CompilerParams(
                    vmem_limit_bytes=vmem_limit),
            )(x, w_fused, b_fused)

        nb = B // batch_block
        return pl.pallas_call(
            kernel,
            out_shape=jax.ShapeDtypeStruct((B, D), x.dtype),
            grid=(nb,),
            in_specs=[
                pl.BlockSpec((batch_block, D), lambda i: (i, 0)),
                pl.BlockSpec((L, D, 3 * D), lambda i: (0, 0, 0)),
                pl.BlockSpec((L, 1, 3 * D), lambda i: (0, 0, 0)),
            ],
            out_specs=pl.BlockSpec((batch_block, D), lambda i: (i, 0)),
            compiler_params=pltpu.CompilerParams(
                dimension_semantics=("parallel",),
                vmem_limit_bytes=vmem_limit),
        )(x, w_fused, b_fused)

    # ------------- Large-L pipelined path (weights stream from HBM) --------
    per_layer_w = D * 3 * D * itemsize
    if layers_per_block is None:
        # ~1-2 MiB weight blocks: DMA-bound, not grid-overhead-bound; default
        # double-buffering of the weight stream is then sufficient.
        target = max(per_layer_w, min(2 << 20, vmem_limit // 8))
        layers_per_block = int(max(1, target // per_layer_w))
    layers_per_block = int(min(layers_per_block, L))
    n_blocks = pl.cdiv(L, layers_per_block)

    kernel = _make_pipelined_kernel(D, layers_per_block, L, f=f)
    return pl.pallas_call(
        kernel,
        out_shape=jax.ShapeDtypeStruct((B, D), x.dtype),
        grid_spec=pltpu.PrefetchScalarGridSpec(
            num_scalar_prefetch=0,
            grid=(n_blocks,),
            in_specs=[
                # Constant index_map => x block DMA'd once, kept resident.
                pl.BlockSpec((B, D), lambda l: (0, 0)),
                pl.BlockSpec((layers_per_block, D, 3 * D), lambda l: (l, 0, 0)),
                pl.BlockSpec((layers_per_block, 1, 3 * D), lambda l: (l, 0, 0)),
            ],
            out_specs=pl.BlockSpec((B, D), lambda l: (0, 0)),
            scratch_shapes=[pltpu.VMEM((B, D), jnp.float32)],
        ),
        compiler_params=pltpu.CompilerParams(
            dimension_semantics=("arbitrary",),   # layers are sequential
            vmem_limit_bytes=vmem_limit),
    )(x, w_fused, b_fused)


def highway_forward(x, wg, bg, wn, bn, wl, bl, *, weight_dtype=jnp.bfloat16,
                    **kwargs):
    """Convenience wrapper (re-fuses weights every call).

    For production, call prepare_highway_params() once at parameter-init time
    and use highway_apply() — that keeps the per-call HBM traffic to the
    kernel's own weight stream only.
    """
    w_fused, b_fused = prepare_highway_params(wg, bg, wn, bn, wl, bl,
                                              weight_dtype=weight_dtype)
    return highway_apply(x, w_fused, b_fused, **kwargs)


# ----------------------------------------------------------------------------
# Pure-JAX references
# ----------------------------------------------------------------------------
def highway_reference_f32(x, wg, bg, wn, bn, wl, bl):
    """Exact PyTorch-module semantics in f32 (f = ReLU)."""
    h = x.astype(jnp.float32)
    for i in range(wg.shape[0]):
        gate = jax.nn.sigmoid(h @ wg[i] + bg[i])
        nonlinear = jnp.maximum(h @ wn[i] + bn[i], 0.0)
        linear = h @ wl[i] + bl[i]
        h = gate * nonlinear + (1.0 - gate) * linear
    return h.astype(x.dtype)


def highway_reference_bf16w(x, wg, bg, wn, bn, wl, bl):
    """Mirrors the kernel's mixed precision: bf16 matmul operands, f32 rest."""
    h = x.astype(jnp.float32)
    for i in range(wg.shape[0]):
        hb = h.astype(jnp.bfloat16)
        gp = jnp.dot(hb, wg[i].astype(jnp.bfloat16),
                     preferred_element_type=jnp.float32) + bg[i]
        npre = jnp.dot(hb, wn[i].astype(jnp.bfloat16),
                       preferred_element_type=jnp.float32) + bn[i]
        lin = jnp.dot(hb, wl[i].astype(jnp.bfloat16),
                      preferred_element_type=jnp.float32) + bl[i]
        gate = jax.nn.sigmoid(gp)
        nonlinear = jnp.maximum(npre, 0.0)
        h = lin + gate * (nonlinear - lin)
    return h.astype(x.dtype)


if __name__ == "__main__":
    # Small TPU-friendly shapes: batch=8, input_size=128, num_layers=12.
    B, D, L = 8, 128, 12
    key = jax.random.PRNGKey(0)
    kx, kwg, kbg, kwn, kbn, kwl, kbl = jax.random.split(key, 7)

    x = jax.random.normal(kx, (B, D), dtype=jnp.float32)
    scale = 1.0 / jnp.sqrt(jnp.float32(D))
    # Weights stored as [in, out] (PyTorch W^T) so the kernel computes x @ W.
    wg = jax.random.normal(kwg, (L, D, D), dtype=jnp.float32) * scale
    wn = jax.random.normal(kwn, (L, D, D), dtype=jnp.float32) * scale
    wl = jax.random.normal(kwl, (L, D, D), dtype=jnp.float32) * scale
    bg = jax.random.normal(kbg, (L, 1, D), dtype=jnp.float32) * scale
    bn = jax.random.normal(kbn, (L, 1, D), dtype=jnp.float32) * scale
    bl = jax.random.normal(kbl, (L, 1, D), dtype=jnp.float32) * scale

    ref32 = highway_reference_f32(x, wg, bg, wn, bn, wl, bl)
    ref16 = highway_reference_bf16w(x, wg, bg, wn, bn, wl, bl)

    # Fuse/cast ONCE at "init time" (hoisted out of the forward path).
    wf32, bfused = prepare_highway_params(wg, bg, wn, bn, wl, bl,
                                          weight_dtype=jnp.float32)
    wf16, _ = prepare_highway_params(wg, bg, wn, bn, wl, bl,
                                     weight_dtype=jnp.bfloat16)

    # 1) Resident fast path, exact f32 weights; L=12 > 8 -> in-kernel fori_loop.
    out = jax.block_until_ready(highway_apply(x, wf32, bfused))
    assert out.shape == (B, D) and out.dtype == x.dtype
    assert jnp.allclose(out, ref32, rtol=1e-2, atol=1e-2), "f32 resident mismatch"

    # 2) Resident fast path, bf16 weight stream (default production config).
    out_b = jax.block_until_ready(highway_apply(x, wf16, bfused))
    assert jnp.allclose(out_b, ref16, rtol=1e-2, atol=1e-2), "bf16 resident mismatch"

    # 3) Small-L fully-unrolled resident path via the convenience wrapper.
    ref32_3 = highway_reference_f32(x, wg[:3], bg[:3], wn[:3], bn[:3], wl[:3], bl[:3])
    out3 = jax.block_until_ready(
        highway_forward(x, wg[:3], bg[:3], wn[:3], bn[:3], wl[:3], bl[:3],
                        weight_dtype=jnp.float32))
    assert jnp.allclose(out3, ref32_3, rtol=1e-2, atol=1e-2), "unrolled path mismatch"

    # 4) Forced pipelined path: multi-layer weight blocks with a ragged tail
    #    (blocks of 5, 5, 2 layers), bf16 weight stream.
    out_p = jax.block_until_ready(
        highway_apply(x, wf16, bfused,
                      resident_weight_budget_bytes=0, layers_per_block=5))
    assert jnp.allclose(out_p, ref16, rtol=1e-2, atol=1e-2), "pipelined path mismatch"

    print("KERNEL_OK")
</pallas_src>

<mosaic_0001>
module attributes {stable_mosaic.version = 11 : i64} {
  func.func @kernel(%arg0: memref<8x128xf32, #tpu.memory_space<vmem>>, %arg1: memref<12x128x384xf32, #tpu.memory_space<vmem>>, %arg2: memref<12x1x384xf32, #tpu.memory_space<vmem>>, %arg3: memref<8x128xf32, #tpu.memory_space<vmem>>) attributes {dimension_semantics = [], scalar_prefetch = 0 : i64, scratch_operands = 0 : i64, tpu.core_type = #tpu.core_type<tc>} {
    %c0 = arith.constant 0 : index
    %c0_0 = arith.constant 0 : index
    %0 = vector.load %arg0[%c0, %c0_0] : memref<8x128xf32, #tpu.memory_space<vmem>>, vector<8x128xf32>
    %c0_i32 = arith.constant 0 : i32
    %c12_i32 = arith.constant 12 : i32
    %1 = arith.addi %c0_i32, %c12_i32 : i32
    %c1_i32 = arith.constant 1 : i32
    %2 = scf.for %arg4 = %c0_i32 to %1 step %c1_i32 iter_args(%arg5 = %0) -> (vector<8x128xf32>)  : i32 {
      %4 = arith.index_cast %arg4 : i32 to index
      %c0_4 = arith.constant 0 : index
      %c0_5 = arith.constant 0 : index
      %5 = vector.load %arg1[%4, %c0_4, %c0_5] : memref<12x128x384xf32, #tpu.memory_space<vmem>>, vector<1x128x384xf32>
      %6 = vector.shape_cast %5 : vector<1x128x384xf32> to vector<128x384xf32>
      %cst = arith.constant dense<0.000000e+00> : vector<8x384xf32>
      %7 = tpu.matmul %arg5, %6, %cst {dimension_numbers = #tpu.dot_dimension_numbers<[1], [0], [0], [1], [0, 0, 1, 1], [], []>} : vector<8x128xf32>, vector<128x384xf32>, vector<8x384xf32> -> vector<8x384xf32>
      %8 = arith.index_cast %arg4 : i32 to index
      %c0_6 = arith.constant 0 : index
      %c0_7 = arith.constant 0 : index
      %9 = vector.load %arg2[%8, %c0_6, %c0_7] : memref<12x1x384xf32, #tpu.memory_space<vmem>>, vector<1x1x384xf32>
      %10 = vector.shape_cast %9 : vector<1x1x384xf32> to vector<1x384xf32>
      %11 = vector.broadcast %10 : vector<1x384xf32> to vector<8x384xf32>
      %12 = arith.addf %7, %11 : vector<8x384xf32>
      %13 = vector.extract_strided_slice %12 {offsets = [0, 0], sizes = [8, 128], strides = [1, 1]} : vector<8x384xf32> to vector<8x128xf32>
      %14 = arith.negf %13 : vector<8x128xf32>
      %15 = math.exp %14 : vector<8x128xf32>
      %cst_8 = arith.constant 1.000000e+00 : f32
      %16 = vector.broadcast %cst_8 : f32 to vector<8x128xf32>
      %17 = arith.addf %16, %15 : vector<8x128xf32>
      %18 = arith.divf %16, %17 : vector<8x128xf32>
      %19 = vector.extract_strided_slice %12 {offsets = [0, 128], sizes = [8, 128], strides = [1, 1]} : vector<8x384xf32> to vector<8x128xf32>
      %cst_9 = arith.constant 0.000000e+00 : f32
      %20 = vector.broadcast %cst_9 : f32 to vector<8x128xf32>
      %21 = arith.maximumf %19, %20 : vector<8x128xf32>
      %22 = vector.extract_strided_slice %12 {offsets = [0, 256], sizes = [8, 128], strides = [1, 1]} : vector<8x384xf32> to vector<8x128xf32>
      %23 = arith.subf %21, %22 : vector<8x128xf32>
      %24 = arith.mulf %18, %23 : vector<8x128xf32>
      %25 = arith.addf %22, %24 : vector<8x128xf32>
      scf.yield %25 : vector<8x128xf32>
    }
    %c12_i32_1 = arith.constant 12 : i32
    %c0_2 = arith.constant 0 : index
    %c0_3 = arith.constant 0 : index
    %3 = vector.load %arg3[%c0_2, %c0_3] : memref<8x128xf32, #tpu.memory_space<vmem>>, vector<8x128xf32>
    tpu.vector_store %arg3[%c0_2, %c0_3], %2 {strides = array<i32>} : memref<8x128xf32, #tpu.memory_space<vmem>>, vector<8x128xf32>,
    return
  }
}

</mosaic_0001>

<bundles_post_ra>
// kernel: tpu_custom_call.1
= control target key start
LH: loop header
LB: loop body
LE: loop exit
PB: predicated region body
PF: predicated region fallthrough
CT: control target
= control target key end

     0   :  { %8 = vsyncpa [#allocation3], 0  ;;  %s628_s0 = inlined_call_operand.hbm [shape: f32[8,128], index: 0, kind: input, shape index: {}]   ;;  %s629_s1 = inlined_call_operand.hbm [shape: f32[12,128,384], index: 1, kind: input, shape index: {}]   ;;  %s630_s2 = inlined_call_operand.hbm [shape: f32[12,1,384], index: 2, kind: input, shape index: {}]   ;;  %s631_s3 = inlined_call_operand.hbm [shape: f32[8,128], index: 3, kind: output, shape index: {}]  }
   0x1   :  { %9 = vsyncpa [#allocation6], 0 }
   0x2   :  { %10 = vsyncpa [#allocation4], 0  ;;  %s499_s12 = smov [#allocation5]  }
   0x3   :  { %s26_s13 = sshll.u32 %s499_s12, 4  ;;  %s27_s13 = int_to_ptr.vmem [resolvable:$true] %s26_s13 }
   0x4   :  { %s405_s14 = scalar_lea.vmem %s27_s13, 73728  ;;  %p410_p1 = scmp.lt.s32.totalorder %s27_s13, %s27_s13 }
   0x5   :  { %p406_p0 = scmp.ne.s32.totalorder %s27_s13, %s405_s14  ;;  %p411_p2 = scmp.lt.s32.totalorder %s405_s14, %s405_s14 }
   0x7   :  { %p412_p3 = por %p411_p2, %p410_p1 }
   0x9   :  { %p413_p4 = pnand %p412_p3, %p406_p0 }
   0xb   :  { %416 = shalt.err (!%p413_p4)
}
   0xc   :  { %s500_s15 = smov 384   ;;  %s501_s16 = smov 24  }
   0xd   :  { %32 = dma.hbm_to_vmem [thread:$0]  %s629_s1, 73728, %s27_s13, [#allocation6], %s500_s15, %s500_s15, %s501_s16  }
   0xe   :  { %s502_s19 = smov [#allocation2]   ;;  %s503_s21 = smov [#allocation7]  }
   0xf   :  { %s17_s20 = sshll.u32 %s502_s19, 4  ;;  %s38_s22 = sshll.u32 %s503_s21, 4  ;;  %s18_s20 = int_to_ptr.vmem [resolvable:$true] %s17_s20  ;;  %s39_s22 = int_to_ptr.vmem [resolvable:$true] %s38_s22 }
  0x10   :  { %s425_s23 = scalar_lea.vmem %s18_s20, 128  ;;  %p430_p6 = scmp.lt.s32.totalorder %s18_s20, %s18_s20 }
  0x11   :  { %p426_p5 = scmp.ne.s32.totalorder %s18_s20, %s425_s23  ;;  %p431_p7 = scmp.lt.s32.totalorder %s425_s23, %s425_s23 }
  0x13   :  { %p432_p8 = por %p431_p7, %p430_p6 }
  0x15   :  { %p433_p9 = pnand %p432_p8, %p426_p5 }
  0x17   :  { %436 = shalt.err (!%p433_p9)
}
  0x18   :  { %20 = dma.hbm_to_vmem [thread:$0]  %s628_s0, 128, %s18_s20, [#allocation3]  }
  0x19   :  { %s445_s26 = scalar_lea.vmem %s39_s22, 576  ;;  %p450_p11 = scmp.lt.s32.totalorder %s39_s22, %s39_s22 }
  0x1a   :  { %p446_p10 = scmp.ne.s32.totalorder %s39_s22, %s445_s26  ;;  %p451_p12 = scmp.lt.s32.totalorder %s445_s26, %s445_s26 }
  0x1c   :  { %p452_p13 = por %p451_p12, %p450_p11 }
  0x1e   :  { %p453_p0 = pnand %p452_p13, %p446_p10 }
  0x20   :  { %456 = shalt.err (!%p453_p0)
}
  0x21   :  { %s504_s1 = smov 48   ;;  %s505_s27 = smov 3  }
  0x22   :  { %44 = dma.hbm_to_vmem [thread:$0]  %s630_s2, 576, %s39_s22, [#allocation6], %s504_s1, %s504_s1, %s505_s27  }
  0x23   :  { %485 = dma.done.wait [#allocation3], 128  }
  0x24   :  { %486 = vsyncadd [#allocation3], 4294967168 }
  0x25   :  { %487 = dma.done.wait [#allocation6], 74304  }
  0x26   :  { %488 = vsyncadd [#allocation6], 4294892992  ;;  %v54_v0 = vld [vmem:[#allocation2] sm:$0xff]   ;;  %s540_s0 = smov 0  }
  0x27 LB: > { %v506_v1 = vmov 0.0   ;;  %s314_s2 = smul.u32 384, %s497_s0  ;;  %vm507_vm0 = vmmov 0   ;;  %v117_v50 = vlaneseq  ;;  %s497_s0 = sphi %s540_s0, %s60_s0   ;;  %v493_v0 = vphi %v54_v0, %v632_v0  }
  0x28   : > { %332 = vmatprep.subr.mxu1 %v506_v1  ;;  %196 = vmatprep.mubr.f32.mxu0 %v506_v1  ;;  %s113_s4 = smul.u32 3, %s497_s0  ;;  %s60_s0 = sadd.s32 1, %s497_s0  }
  0x29   : > { %364 = vmatprep.mubr.msk.f32.mxu1 %vm507_vm0, %v506_v1  ;;  %s552_s30 = scalar_lea.vmem [#allocation5], %s314_s2  ;;  %v118_v51 = vshrl.u32 %v117_v50, 7  ;;  %p57_p1 = scmp.ge.s32.totalorder %s60_s0, 12  }
  0x2a   : > { %v111_v2 = vld [vmem:[%s552_s30 + $0x170] sm:$0xff]  ;;  %v110_v3 = vld [vmem:[%s552_s30 + $0x168] sm:$0xff]  ;;  %v108_v4 = vld [vmem:[%s552_s30 + $0x158] sm:$0xff]  ;;  %s114_s5 = scalar_lea.vmem [#allocation7], %s113_s4  ;;  %s508_s6 = smov (%p57_p1), [#allocation8]  }
  0x2b   : > { %132 = vmatprep.subr.mxu0 %v111_v2  ;;  %v107_v5 = vld [vmem:[%s552_s30 + $0x150] sm:$0xff]  ;;  %v105_v6 = vld [vmem:[%s552_s30 + $0x140] sm:$0xff]  ;;  %v112_v7 = vld [vmem:[%s552_s30 + $0x178] sm:$0xff]  ;;  %v119_v52 = vsub.s32 0, %v118_v51  ;;  %v123_v60 = vsub.s32 1, %v118_v51  ;;  %s290_s7 = sshll.u32 (%p57_p1), %s508_s6, 4  ;;  %s291_s7 = int_to_ptr.vmem [resolvable:$true] %s290_s7 }
  0x2c   : > { %133 = vmatpush1.msra.mxu0 %v110_v3  ;;  %v104_v8 = vld [vmem:[%s552_s30 + $0x138] sm:$0xff]  ;;  %333 = vmatpush3.msra.mxu1 %v112_v7  ;;  %v109_v9 = vld [vmem:[%s552_s30 + $0x160] sm:$0xff]  ;;  %v102_v10 = vld [vmem:[%s552_s30 + $0x128] sm:$0xff]  ;;  %s457_s8 = scalar_lea.vmem (%p57_p1), %s291_s7, 128  ;;  %p462_p3 = scmp.lt.s32.totalorder (%p57_p1), %s291_s7, %s291_s7 }
  0x2d   : > { %134 = vmatprep.subr.mxu0 %v108_v4  ;;  %334 = vmatprep.subr.mxu1 %v506_v1  ;;  %v106_v11 = vld [vmem:[%s552_s30 + $0x148] sm:$0xff]  ;;  %v101_v12 = vld [vmem:[%s552_s30 + $0x120] sm:$0xff]  ;;  %v99_v13 = vld [vmem:[%s552_s30 + $0x110] sm:$0xff]  ;;  %p458_p2 = scmp.ne.s32.totalorder (%p57_p1), %s291_s7, %s457_s8  ;;  %p463_p4 = scmp.lt.s32.totalorder (%p57_p1), %s457_s8, %s457_s8 }
  0x2e   : > { %135 = vmatpush1.msra.mxu0 %v107_v5  ;;  %335 = vmatpush3.msra.mxu1 %v109_v9  ;;  %v103_v14 = vld [vmem:[%s552_s30 + $0x130] sm:$0xff]  ;;  %v98_v15 = vld [vmem:[%s552_s30 + $0x108] sm:$0xff]  ;;  %v96_v16 = vld [vmem:[%s552_s30 + $0xf8] sm:$0xff] }
  0x2f   : > { %136 = vmatprep.subr.mxu0 %v105_v6  ;;  %336 = vmatprep.subr.mxu1 %v506_v1  ;;  %v100_v17 = vld [vmem:[%s552_s30 + $0x118] sm:$0xff]  ;;  %v95_v18 = vld [vmem:[%s552_s30 + $0xf0] sm:$0xff]  ;;  %v93_v19 = vld [vmem:[%s552_s30 + $0xe0] sm:$0xff]  ;;  %p464_p5 = por (%p57_p1), %p463_p4, %p462_p3 }
  0x30   : > { %137 = vmatpush1.msra.mxu0 %v104_v8  ;;  %337 = vmatpush3.msra.mxu1 %v106_v11  ;;  %v97_v20 = vld [vmem:[%s552_s30 + $0x100] sm:$0xff]  ;;  %v92_v21 = vld [vmem:[%s552_s30 + $0xd8] sm:$0xff]  ;;  %v90_v22 = vld [vmem:[%s552_s30 + $0xc8] sm:$0xff] }
  0x31   : > { %138 = vmatprep.subr.mxu0 %v102_v10  ;;  %338 = vmatprep.subr.mxu1 %v506_v1  ;;  %v94_v23 = vld [vmem:[%s552_s30 + $0xe8] sm:$0xff]  ;;  %v89_v24 = vld [vmem:[%s552_s30 + $0xc0] sm:$0xff]  ;;  %v87_v25 = vld [vmem:[%s552_s30 + $0xb0] sm:$0xff]  ;;  %p465_p6 = pnand (%p57_p1), %p464_p5, %p458_p2 }
  0x32   : > { %139 = vmatpush1.msra.mxu0 %v101_v12  ;;  %339 = vmatpush3.msra.mxu1 %v103_v14  ;;  %v91_v26 = vld [vmem:[%s552_s30 + $0xd0] sm:$0xff]  ;;  %v86_v27 = vld [vmem:[%s552_s30 + $0xa8] sm:$0xff]  ;;  %v84_v28 = vld [vmem:[%s552_s30 + $0x98] sm:$0xff] }
  0x33   : > { %140 = vmatprep.subr.mxu0 %v99_v13  ;;  %340 = vmatprep.subr.mxu1 %v506_v1  ;;  %v88_v29 = vld [vmem:[%s552_s30 + $0xb8] sm:$0xff]  ;;  %v83_v30 = vld [vmem:[%s552_s30 + $0x90] sm:$0xff]  ;;  %v81_v31 = vld [vmem:[%s552_s30 + $0x80] sm:$0xff] }
  0x34   : > { %141 = vmatpush1.msra.mxu0 %v98_v15  ;;  %341 = vmatpush3.msra.mxu1 %v100_v17  ;;  %v85_v32 = vld [vmem:[%s552_s30 + $0xa0] sm:$0xff]  ;;  %v80_v33 = vld [vmem:[%s552_s30 + $0x78] sm:$0xff]  ;;  %v78_v34 = vld [vmem:[%s552_s30 + $0x68] sm:$0xff] }
  0x35   : > { %142 = vmatprep.subr.mxu0 %v96_v16  ;;  %342 = vmatprep.subr.mxu1 %v506_v1  ;;  %v82_v35 = vld [vmem:[%s552_s30 + $0x88] sm:$0xff]  ;;  %v77_v36 = vld [vmem:[%s552_s30 + $0x60] sm:$0xff]  ;;  %v75_v37 = vld [vmem:[%s552_s30 + $0x50] sm:$0xff] }
  0x36   : > { %143 = vmatpush1.msra.mxu0 %v95_v18  ;;  %343 = vmatpush3.msra.mxu1 %v97_v20  ;;  %v79_v38 = vld [vmem:[%s552_s30 + $0x70] sm:$0xff]  ;;  %v74_v39 = vld [vmem:[%s552_s30 + $0x48] sm:$0xff]  ;;  %v72_v40 = vld [vmem:[%s552_s30 + $0x38] sm:$0xff] }
  0x37   : > { %144 = vmatprep.subr.mxu0 %v93_v19  ;;  %344 = vmatprep.subr.mxu1 %v506_v1  ;;  %v76_v41 = vld [vmem:[%s552_s30 + $0x58] sm:$0xff]  ;;  %v71_v42 = vld [vmem:[%s552_s30 + $0x30] sm:$0xff]  ;;  %v69_v43 = vld [vmem:[%s552_s30 + $0x20] sm:$0xff] }
  0x38   : > { %145 = vmatpush1.msra.mxu0 %v92_v21  ;;  %345 = vmatpush3.msra.mxu1 %v94_v23  ;;  %v73_v44 = vld [vmem:[%s552_s30 + $0x40] sm:$0xff]  ;;  %v68_v45 = vld [vmem:[%s552_s30 + $0x18] sm:$0xff]  ;;  %v66_v46 = vld [vmem:[%s552_s30 + $0x8] sm:$0xff] }
  0x39   : > { %146 = vmatprep.subr.mxu0 %v90_v22  ;;  %346 = vmatprep.subr.mxu1 %v506_v1  ;;  %v70_v47 = vld [vmem:[%s552_s30 + $0x28] sm:$0xff]  ;;  %v65_v48 = vld [vmem:[%s552_s30] sm:$0xff]  ;;  %v67_v49 = vld [vmem:[%s552_s30 + $0x10] sm:$0xff] }
  0x3a   : > { %147 = vmatpush1.msra.mxu0 %v89_v24  ;;  %347 = vmatpush3.msra.mxu1 %v91_v26  ;;  %v115_v53 = vld [vmem:[%s114_s5] sm:$0x7] }
  0x3b   : > { %148 = vmatprep.subr.mxu0 %v87_v25  ;;  %348 = vmatprep.subr.mxu1 %v506_v1  ;;  %v120_v54 = vrot.slane %v115_v53, %v119_v52  ;;  %v124_v63 = vrot.slane %v115_v53, %v123_v60 }
  0x3c   : > { %149 = vmatpush1.msra.mxu0 %v86_v27  ;;  %349 = vmatpush3.msra.mxu1 %v88_v29 }
  0x3d   : > { %150 = vmatprep.subr.mxu0 %v84_v28  ;;  %350 = vmatprep.subr.mxu1 %v506_v1 }
  0x3e   : > { %151 = vmatpush1.msra.mxu0 %v83_v30  ;;  %351 = vmatpush3.msra.mxu1 %v85_v32 }
  0x3f   : > { %152 = vmatprep.subr.mxu0 %v81_v31  ;;  %352 = vmatprep.subr.mxu1 %v506_v1 }
  0x40   : > { %153 = vmatpush1.msra.mxu0 %v80_v33  ;;  %353 = vmatpush3.msra.mxu1 %v82_v35 }
  0x41   : > { %154 = vmatprep.subr.mxu0 %v78_v34  ;;  %354 = vmatprep.subr.mxu1 %v506_v1 }
  0x42   : > { %155 = vmatpush1.msra.mxu0 %v77_v36  ;;  %355 = vmatpush3.msra.mxu1 %v79_v38 }
  0x43   : > { %156 = vmatprep.subr.mxu0 %v75_v37  ;;  %356 = vmatprep.subr.mxu1 %v506_v1 }
  0x44   : > { %157 = vmatpush1.msra.mxu0 %v74_v39  ;;  %357 = vmatpush3.msra.mxu1 %v76_v41 }
  0x45   : > { %158 = vmatprep.subr.mxu0 %v72_v40  ;;  %358 = vmatprep.subr.mxu1 %v506_v1 }
  0x46   : > { %159 = vmatpush1.msra.mxu0 %v71_v42  ;;  %359 = vmatpush3.msra.mxu1 %v73_v44 }
  0x47   : > { %160 = vmatprep.subr.mxu0 %v69_v43  ;;  %360 = vmatprep.subr.mxu1 %v506_v1 }
  0x48   : > { %161 = vmatpush1.msra.mxu0 %v68_v45  ;;  %361 = vmatpush3.msra.mxu1 %v70_v47 }
  0x49   : > { %162 = vmatprep.subr.mxu0 %v66_v46  ;;  %362 = vmatprep.subr.mxu1 %v506_v1  ;;  %v127_v1 = vsub.s32 2, %v118_v51 }
  0x4a   : > { %163 = vmatpush1.msra.mxu0 %v65_v48  ;;  %363 = vmatpush3.msra.mxu1 %v67_v49 }
  0x4b   : > { %197 = vmatmul.mubr.f32.vlgmr.msra.gmra.mxu0 %v493_v0  ;;  %365 = vmatmul.mubr.f32.vlgmr.msra.gmra.mxu1 %v493_v0  ;;  %v128_v3 = vrot.slane %v115_v53, %v127_v1 }
 0x10b   : > { %v198_v55 = vpop.f32.mrf.mxu0  ;;  %v269_v57 = vpop.f32.mrf.mxu1 }
 0x10c   : > { %v199_v56 = vadd.f32 %v198_v55, %v120_v54  ;;  %v270_v5 = vadd.f32 %v269_v57, %v128_v3 }
 0x10d   : > { %v366_v59 = vpop.f32.mrf.mxu1  ;;  %v200_v0 = vpop.f32.mrf.mxu0 }
 0x10e   : > { %v313_v58 = vmul.f32 -1.442695, %v199_v56  ;;  %v201_v2 = vadd.f32 %v200_v0, %v124_v63 }
 0x110   : > { %393 = vpow2.f32 %v313_v58  ;;  %v279_v4 = vmax.f32 %v201_v2, 0.0 }
 0x112   : > { %v280_v6 = vsub.f32 %v279_v4, %v270_v5 }
 0x11d   : > { %v394_v61 = vpop.eup %393 }
 0x11e   : > { %v276_v62 = vadd.f32 1.0, %v394_v61 }
 0x120   : > { %395 = vrcp.f32 %v276_v62 }
 0x12d   : > { %v396_v7 = vpop.eup %395 }
 0x12e   : > { %v281_v8 = vmul.f32 %v396_v7, %v280_v6  ;;  %59 = sbr.rel (!%p57_p1) target bundleno = 39 (0x27), region = 53 }
 0x130   : > { %v282_v9 = vadd.f32 %v281_v8, %v270_v5  }
 0x132   : > { %v632_v0 = vmov %v282_v9  ;;  %283 = vst [vmem:[#allocation8] sm:$0xff] (%p57_p1), %v282_v9 }
 0x133   :  { %468 = shalt.err (!%p465_p6)
}
 0x134   :  { %293 = dma.vmem_to_hbm [thread:$0]  %s291_s7, 128, %s631_s3, [#allocation4]  }
 0x135   :  { %489 = dma.done.wait [#allocation4], 128  }
 0x136   :  { %490 = vsyncadd [#allocation4], 4294967168 }
 0x137   :  { %297 = vsyncpa [#allocation3], 1 }
 0x138   :  { %298 = vsyncpa [#allocation6], 1 }
 0x139   :  { %299 = vsyncpa [#allocation4], 1 }

</bundles_post_ra>
